<compile_context>
chip_gen: v6e
topology: v6e:2x2x1
jax: 0.10.0
libtpu: 0.0.40
codegen_flags: <defaults>
</compile_context>

<pallas_src>
import functools
import math

import jax
import jax.numpy as jnp
from jax.experimental import pallas as pl
from jax.experimental.pallas import tpu as pltpu

_LOG2E = 1.4426950408889634  # log2(e)


def _supports_bf16_eup() -> bool:
    """bf16 EUP/VPU exists on v6e/v7x; v5e would pay pack/unpack cost."""
    try:
        kind = jax.devices()[0].device_kind.lower()
    except Exception:  # pragma: no cover - defensive; f32 path is always correct
        return False
    return any(tag in kind for tag in ("v6", "v7", "tpu6", "tpu7"))


def _flash_fwd_kernel(q_ref, k_ref, v_ref, o_ref, m_sc, l_sc, acc_sc, *,
                      scale_log2e, bf16_softmax):
    """One (batch, q-block, kv-block) step of online-softmax flash attention.

    Block layouts (native channel-first):
      q_ref : (1, D, tq)     k_ref/v_ref : (1, D, tk)     o_ref : (1, D, tq)
      m_sc/l_sc : (1, 1, tq) f32 (lane-dense per-query stats, log2 domain for m)
      acc_sc    : (1, D, tq) f32
    """
    kv = pl.program_id(2)

    @pl.when(kv == 0)
    def _():
        m_sc[...] = jnp.full_like(m_sc, -jnp.inf)
        l_sc[...] = jnp.zeros_like(l_sc)
        acc_sc[...] = jnp.zeros_like(acc_sc)

    # Fold (softmax scale * log2(e)) into q once per block; bf16 at MXU input.
    q_s = (q_ref[...] * scale_log2e).astype(jnp.bfloat16)        # (1, D, tq)

    # bf16 BEFORE the transpose: half the XLU subtile work vs. f32 swapaxes.
    k_t = jnp.swapaxes(k_ref[...].astype(jnp.bfloat16), 1, 2)    # (1, tk, D)
    v_b = v_ref[...].astype(jnp.bfloat16)                        # (1, D, tk)

    # scores[k, q] = sum_d K[k, d] * Q[d, q], already in log2 units.
    s = jnp.einsum("bkd,bdq->bkq", k_t, q_s,
                   preferred_element_type=jnp.float32)           # (1, tk, tq)

    # Online softmax (base-2), per-query stats along the lane axis (1, 1, tq).
    m_prev = m_sc[...]
    m_new = jnp.maximum(m_prev, s.max(axis=1, keepdims=True))    # (1, 1, tq)
    alpha = jnp.exp2(m_prev - m_new)                             # (1, 1, tq)
    s_shift = s - m_new                                          # (1, tk, tq)
    if bf16_softmax:
        # bf16 exp2 on the EUP (v6e/v7x): halves EUP push work + p footprint,
        # and feeds the PV matmul directly without a later pack.
        p = jnp.exp2(s_shift.astype(jnp.bfloat16))
    else:
        # v5e: keep f32 exp (no bf16 EUP/VPU there).
        p = jnp.exp2(s_shift)

    l_sc[...] = alpha * l_sc[...] + jnp.sum(p, axis=1, keepdims=True,
                                            dtype=jnp.float32)
    # out[d, q] += sum_k V[d, k] * P[k, q]   -> (1, D, tq), f32 accumulate.
    acc_sc[...] = alpha * acc_sc[...] + jnp.einsum(
        "bdk,bkq->bdq", v_b, p.astype(jnp.bfloat16),
        preferred_element_type=jnp.float32)
    m_sc[...] = m_new

    @pl.when(kv == pl.num_programs(2) - 1)
    def _():
        # Reciprocal on the EUP; accuracy impact far below the bf16 MXU noise.
        inv_l = pl.reciprocal(l_sc[...], approx=True)
        # Lane-dense (1, D, tq) store: full-width vst, no masked partial stores.
        o_ref[...] = (acc_sc[...] * inv_l).astype(o_ref.dtype)


def _flash_attention_bds(q, k, v, *, tq=None, tk=None):
    """q, k, v: (B, D, S) -> out: (B, D, S). Non-causal, scale = 1/sqrt(D)."""
    B, D, S = q.shape
    if tq is None:
        tq = min(256, S)
    if tk is None:
        tk = min(256, S)
    # TODO(synk): ragged S (S % tile != 0) would need a masked last kv tile.
    assert S % tq == 0 and S % tk == 0, "seq length must tile evenly"

    scale_log2e = _LOG2E / math.sqrt(D)
    kernel = functools.partial(_flash_fwd_kernel,
                               scale_log2e=scale_log2e,
                               bf16_softmax=_supports_bf16_eup())

    return pl.pallas_call(
        kernel,
        out_shape=jax.ShapeDtypeStruct((B, D, S), q.dtype),
        grid_spec=pltpu.PrefetchScalarGridSpec(
            num_scalar_prefetch=0,
            # B leads as a parallel axis (engages the 2nd TC on v7x); the kv
            # reduction axis stays last / "arbitrary".
            grid=(B, S // tq, S // tk),
            in_specs=[
                pl.BlockSpec((1, D, tq), lambda b, qi, ki: (b, 0, qi)),
                pl.BlockSpec((1, D, tk), lambda b, qi, ki: (b, 0, ki)),
                pl.BlockSpec((1, D, tk), lambda b, qi, ki: (b, 0, ki)),
            ],
            out_specs=pl.BlockSpec((1, D, tq), lambda b, qi, ki: (b, 0, qi)),
            scratch_shapes=[
                pltpu.VMEM((1, 1, tq), jnp.float32),   # running max m_i (log2 domain)
                pltpu.VMEM((1, 1, tq), jnp.float32),   # running denom l_i
                pltpu.VMEM((1, D, tq), jnp.float32),   # output accumulator
            ],
        ),
        compiler_params=pltpu.CompilerParams(
            dimension_semantics=("parallel", "parallel", "arbitrary")
        ),
    )(q, k, v)


def flash_module_forward(q, k, v):
    """Mirror of FlashModule.forward.  q, k, v: (B, D, S) -> out: (B, D, S).

    No layout transposes or dtype casts in the wrapper: the kernel consumes
    the native (B, D, S) layout in whatever dtype the producer emits (bf16 is
    welcome and halves input DMA bytes) and writes (B, D, S) directly.
    """
    return _flash_attention_bds(q, k, v)


def _reference_attention(q, k, v):
    """Plain-JAX reference: softmax(QK^T/sqrt(D))V in (B, D, S) layout."""
    qb = jnp.transpose(q, (0, 2, 1)).astype(jnp.float32)
    kb = jnp.transpose(k, (0, 2, 1)).astype(jnp.float32)
    vb = jnp.transpose(v, (0, 2, 1)).astype(jnp.float32)
    D = qb.shape[-1]
    s = jnp.einsum("bqd,bkd->bqk", qb, kb) / math.sqrt(D)
    p = jax.nn.softmax(s, axis=-1)
    o = jnp.einsum("bqk,bkd->bqd", p, vb)
    return jnp.transpose(o, (0, 2, 1))


if __name__ == "__main__":
    # Inputs are (B, D, S) as in the PyTorch module (channel-first, 1 head).
    B, D, S = 2, 32, 256

    key = jax.random.PRNGKey(0)
    kq, kk, kv_ = jax.random.split(key, 3)
    q = jax.random.normal(kq, (B, D, S), dtype=jnp.float32)
    k = jax.random.normal(kk, (B, D, S), dtype=jnp.float32)
    v = jax.random.normal(kv_, (B, D, S), dtype=jnp.float32)

    out = jax.jit(flash_module_forward)(q, k, v)
    out = jax.block_until_ready(out)

    ref = _reference_attention(q, k, v)
    assert out.shape == (B, D, S), out.shape
    max_err = float(jnp.max(jnp.abs(out - ref)))
    # bf16 MXU inputs + (on v6e/v7x) bf16 softmax weights, f32 accumulation:
    # expect ~1e-2 max abs error; 4e-2 leaves margin for the bf16 exp path.
    assert jnp.allclose(out, ref, atol=4e-2, rtol=4e-2), max_err

    print("KERNEL_OK")
</pallas_src>

<mosaic_0001>
module attributes {stable_mosaic.version = 11 : i64} {
  func.func @_flash_fwd_kernel(%arg0: i32, %arg1: i32, %arg2: i32, %arg3: memref<1x32x256xf32, #tpu.memory_space<vmem>>, %arg4: memref<1x32x256xf32, #tpu.memory_space<vmem>>, %arg5: memref<1x32x256xf32, #tpu.memory_space<vmem>>, %arg6: memref<1x32x256xf32, #tpu.memory_space<vmem>>, %arg7: memref<1x1x256xf32, #tpu.memory_space<vmem>>, %arg8: memref<1x1x256xf32, #tpu.memory_space<vmem>>, %arg9: memref<1x32x256xf32, #tpu.memory_space<vmem>>) attributes {dimension_semantics = [#tpu.dimension_semantics<parallel>, #tpu.dimension_semantics<parallel>, #tpu.dimension_semantics<arbitrary>], iteration_bounds = array<i64: 2, 1, 1>, scalar_prefetch = 0 : i64, scratch_operands = 3 : i64, tpu.core_type = #tpu.core_type<tc>, window_params = [{transform_indices = @transform_0, window_bounds = array<i64: 1, 32, 256>}, {transform_indices = @transform_1, window_bounds = array<i64: 1, 32, 256>}, {transform_indices = @transform_2, window_bounds = array<i64: 1, 32, 256>}, {transform_indices = @transform_3, window_bounds = array<i64: 1, 32, 256>}]} {
    %c0_i32 = arith.constant 0 : i32
    %0 = arith.cmpi eq, %arg2, %c0_i32 : i32
    %1 = arith.extui %0 : i1 to i32
    %c0_i32_0 = arith.constant 0 : i32
    %2 = arith.cmpi ne, %1, %c0_i32_0 : i32
    scf.if %2 {
      %cst_33 = arith.constant 0xFF800000 : f32
      %39 = vector.broadcast %cst_33 : f32 to vector<1x1x256xf32>
      %c0_34 = arith.constant 0 : index
      %c0_35 = arith.constant 0 : index
      %c0_36 = arith.constant 0 : index
      %40 = vector.load %arg7[%c0_34, %c0_35, %c0_36] : memref<1x1x256xf32, #tpu.memory_space<vmem>>, vector<1x1x256xf32>
      tpu.vector_store %arg7[%c0_34, %c0_35, %c0_36], %39 {strides = array<i32>} : memref<1x1x256xf32, #tpu.memory_space<vmem>>, vector<1x1x256xf32>,
      %cst_37 = arith.constant 0.000000e+00 : f32
      %41 = vector.broadcast %cst_37 : f32 to vector<1x1x256xf32>
      %c0_38 = arith.constant 0 : index
      %c0_39 = arith.constant 0 : index
      %c0_40 = arith.constant 0 : index
      %42 = vector.load %arg8[%c0_38, %c0_39, %c0_40] : memref<1x1x256xf32, #tpu.memory_space<vmem>>, vector<1x1x256xf32>
      tpu.vector_store %arg8[%c0_38, %c0_39, %c0_40], %41 {strides = array<i32>} : memref<1x1x256xf32, #tpu.memory_space<vmem>>, vector<1x1x256xf32>,
      %cst_41 = arith.constant 0.000000e+00 : f32
      %43 = vector.broadcast %cst_41 : f32 to vector<1x32x256xf32>
      %c0_42 = arith.constant 0 : index
      %c0_43 = arith.constant 0 : index
      %c0_44 = arith.constant 0 : index
      %44 = vector.load %arg9[%c0_42, %c0_43, %c0_44] : memref<1x32x256xf32, #tpu.memory_space<vmem>>, vector<1x32x256xf32>
      tpu.vector_store %arg9[%c0_42, %c0_43, %c0_44], %43 {strides = array<i32>} : memref<1x32x256xf32, #tpu.memory_space<vmem>>, vector<1x32x256xf32>,
    } else {
    }
    %c0 = arith.constant 0 : index
    %c0_1 = arith.constant 0 : index
    %c0_2 = arith.constant 0 : index
    %3 = vector.load %arg3[%c0, %c0_1, %c0_2] : memref<1x32x256xf32, #tpu.memory_space<vmem>>, vector<1x32x256xf32>
    %cst = arith.constant 0.255034864 : f32
    %4 = vector.broadcast %cst : f32 to vector<1x32x256xf32>
    %5 = arith.mulf %3, %4 : vector<1x32x256xf32>
    %6 = arith.truncf %5 : vector<1x32x256xf32> to vector<1x32x256xbf16>
    %c0_3 = arith.constant 0 : index
    %c0_4 = arith.constant 0 : index
    %c0_5 = arith.constant 0 : index
    %7 = vector.load %arg4[%c0_3, %c0_4, %c0_5] : memref<1x32x256xf32, #tpu.memory_space<vmem>>, vector<1x32x256xf32>
    %8 = arith.truncf %7 : vector<1x32x256xf32> to vector<1x32x256xbf16>
    %9 = tpu.transpose %8, [0, 2, 1] : vector<1x32x256xbf16> -> vector<1x256x32xbf16>
    %c0_6 = arith.constant 0 : index
    %c0_7 = arith.constant 0 : index
    %c0_8 = arith.constant 0 : index
    %10 = vector.load %arg5[%c0_6, %c0_7, %c0_8] : memref<1x32x256xf32, #tpu.memory_space<vmem>>, vector<1x32x256xf32>
    %11 = arith.truncf %10 : vector<1x32x256xf32> to vector<1x32x256xbf16>
    "tpu.trace_start"() <{level = 10 : i32, message = "bkd,bdq->bkq"}> : () -> ()
    %cst_9 = arith.constant dense<0.000000e+00> : vector<1x256x256xf32>
    %12 = tpu.matmul %9, %6, %cst_9 {dimension_numbers = #tpu.dot_dimension_numbers<[2], [1], [1], [2], [0, 0, 0, 1, 1, 2], [0], [0]>} : vector<1x256x32xbf16>, vector<1x32x256xbf16>, vector<1x256x256xf32> -> vector<1x256x256xf32>
    "tpu.trace_stop"() : () -> ()
    %c0_10 = arith.constant 0 : index
    %c0_11 = arith.constant 0 : index
    %c0_12 = arith.constant 0 : index
    %13 = vector.load %arg7[%c0_10, %c0_11, %c0_12] : memref<1x1x256xf32, #tpu.memory_space<vmem>>, vector<1x1x256xf32>
    %cst_13 = arith.constant dense<0xFF800000> : vector<1x256xf32>
    %14 = vector.multi_reduction <maximumf>, %12, %cst_13 [1] : vector<1x256x256xf32> to vector<1x256xf32>
    %15 = vector.shape_cast %14 : vector<1x256xf32> to vector<1x1x256xf32>
    %16 = arith.maximumf %13, %15 : vector<1x1x256xf32>
    %17 = arith.subf %13, %16 : vector<1x1x256xf32>
    %18 = math.exp2 %17 : vector<1x1x256xf32>
    %19 = vector.broadcast %16 : vector<1x1x256xf32> to vector<1x256x256xf32>
    %20 = arith.subf %12, %19 : vector<1x256x256xf32>
    %21 = math.exp2 %20 : vector<1x256x256xf32>
    %c0_14 = arith.constant 0 : index
    %c0_15 = arith.constant 0 : index
    %c0_16 = arith.constant 0 : index
    %22 = vector.load %arg8[%c0_14, %c0_15, %c0_16] : memref<1x1x256xf32, #tpu.memory_space<vmem>>, vector<1x1x256xf32>
    %23 = arith.mulf %18, %22 : vector<1x1x256xf32>
    %cst_17 = arith.constant dense<0.000000e+00> : vector<1x256xf32>
    %24 = vector.multi_reduction <add>, %21, %cst_17 [1] : vector<1x256x256xf32> to vector<1x256xf32>
    %25 = vector.shape_cast %24 : vector<1x256xf32> to vector<1x1x256xf32>
    %26 = arith.addf %23, %25 : vector<1x1x256xf32>
    %c0_18 = arith.constant 0 : index
    %c0_19 = arith.constant 0 : index
    %c0_20 = arith.constant 0 : index
    %27 = vector.load %arg8[%c0_18, %c0_19, %c0_20] : memref<1x1x256xf32, #tpu.memory_space<vmem>>, vector<1x1x256xf32>
    tpu.vector_store %arg8[%c0_18, %c0_19, %c0_20], %26 {strides = array<i32>} : memref<1x1x256xf32, #tpu.memory_space<vmem>>, vector<1x1x256xf32>,
    %c0_21 = arith.constant 0 : index
    %c0_22 = arith.constant 0 : index
    %c0_23 = arith.constant 0 : index
    %28 = vector.load %arg9[%c0_21, %c0_22, %c0_23] : memref<1x32x256xf32, #tpu.memory_space<vmem>>, vector<1x32x256xf32>
    %29 = vector.broadcast %18 : vector<1x1x256xf32> to vector<1x32x256xf32>
    %30 = arith.mulf %29, %28 : vector<1x32x256xf32>
    %31 = arith.truncf %21 : vector<1x256x256xf32> to vector<1x256x256xbf16>
    "tpu.trace_start"() <{level = 10 : i32, message = "bdk,bkq->bdq"}> : () -> ()
    %cst_24 = arith.constant dense<0.000000e+00> : vector<1x32x256xf32>
    %32 = tpu.matmul %11, %31, %cst_24 {dimension_numbers = #tpu.dot_dimension_numbers<[2], [1], [1], [2], [0, 0, 0, 1, 1, 2], [0], [0]>} : vector<1x32x256xbf16>, vector<1x256x256xbf16>, vector<1x32x256xf32> -> vector<1x32x256xf32>
    "tpu.trace_stop"() : () -> ()
    %33 = arith.addf %30, %32 : vector<1x32x256xf32>
    %c0_25 = arith.constant 0 : index
    %c0_26 = arith.constant 0 : index
    %c0_27 = arith.constant 0 : index
    %34 = vector.load %arg9[%c0_25, %c0_26, %c0_27] : memref<1x32x256xf32, #tpu.memory_space<vmem>>, vector<1x32x256xf32>
    tpu.vector_store %arg9[%c0_25, %c0_26, %c0_27], %33 {strides = array<i32>} : memref<1x32x256xf32, #tpu.memory_space<vmem>>, vector<1x32x256xf32>,
    %c0_28 = arith.constant 0 : index
    %c0_29 = arith.constant 0 : index
    %c0_30 = arith.constant 0 : index
    %35 = vector.load %arg7[%c0_28, %c0_29, %c0_30] : memref<1x1x256xf32, #tpu.memory_space<vmem>>, vector<1x1x256xf32>
    tpu.vector_store %arg7[%c0_28, %c0_29, %c0_30], %16 {strides = array<i32>} : memref<1x1x256xf32, #tpu.memory_space<vmem>>, vector<1x1x256xf32>,
    %c0_i32_31 = arith.constant 0 : i32
    %36 = arith.cmpi eq, %arg2, %c0_i32_31 : i32
    %37 = arith.extui %36 : i1 to i32
    %c0_i32_32 = arith.constant 0 : i32
    %38 = arith.cmpi ne, %37, %c0_i32_32 : i32
    scf.if %38 {
      %c0_33 = arith.constant 0 : index
      %c0_34 = arith.constant 0 : index
      %c0_35 = arith.constant 0 : index
      %39 = vector.load %arg8[%c0_33, %c0_34, %c0_35] : memref<1x1x256xf32, #tpu.memory_space<vmem>>, vector<1x1x256xf32>
      %40 = tpu.reciprocal %39 {approx = true} : vector<1x1x256xf32> -> vector<1x1x256xf32>
      %c0_36 = arith.constant 0 : index
      %c0_37 = arith.constant 0 : index
      %c0_38 = arith.constant 0 : index
      %41 = vector.load %arg9[%c0_36, %c0_37, %c0_38] : memref<1x32x256xf32, #tpu.memory_space<vmem>>, vector<1x32x256xf32>
      %42 = vector.broadcast %40 : vector<1x1x256xf32> to vector<1x32x256xf32>
      %43 = arith.mulf %41, %42 : vector<1x32x256xf32>
      %c0_39 = arith.constant 0 : index
      %c0_40 = arith.constant 0 : index
      %c0_41 = arith.constant 0 : index
      %44 = vector.load %arg6[%c0_39, %c0_40, %c0_41] : memref<1x32x256xf32, #tpu.memory_space<vmem>>, vector<1x32x256xf32>
      tpu.vector_store %arg6[%c0_39, %c0_40, %c0_41], %43 {strides = array<i32>} : memref<1x32x256xf32, #tpu.memory_space<vmem>>, vector<1x32x256xf32>,
    } else {
    }
    return
  }
  func.func @transform_0(%arg0: i32, %arg1: i32, %arg2: i32) -> (i32, i32, i32) {
    %c0_i32 = arith.constant 0 : i32
    %c0_i32_0 = arith.constant 0 : i32
    return %arg0, %c0_i32, %arg1 : i32, i32, i32
  }
  func.func @transform_1(%arg0: i32, %arg1: i32, %arg2: i32) -> (i32, i32, i32) {
    %c0_i32 = arith.constant 0 : i32
    %c0_i32_0 = arith.constant 0 : i32
    return %arg0, %c0_i32, %arg2 : i32, i32, i32
  }
  func.func @transform_2(%arg0: i32, %arg1: i32, %arg2: i32) -> (i32, i32, i32) {
    %c0_i32 = arith.constant 0 : i32
    %c0_i32_0 = arith.constant 0 : i32
    return %arg0, %c0_i32, %arg2 : i32, i32, i32
  }
  func.func @transform_3(%arg0: i32, %arg1: i32, %arg2: i32) -> (i32, i32, i32) {
    %c0_i32 = arith.constant 0 : i32
    %c0_i32_0 = arith.constant 0 : i32
    return %arg0, %c0_i32, %arg1 : i32, i32, i32
  }
}

</mosaic_0001>

<bundles_post_ra>
// kernel: flash_module_forward.1
= control target key start
LH: loop header
LB: loop body
LE: loop exit
PB: predicated region body
PF: predicated region fallthrough
CT: control target
= control target key end

     0   :  { %s2592_s0 = inlined_call_operand.hbm [shape: f32[2,32,256], index: 0, kind: input, shape index: {}]   ;;  %s2593_s1 = inlined_call_operand.hbm [shape: f32[2,32,256], index: 1, kind: input, shape index: {}]   ;;  %s2594_s2 = inlined_call_operand.hbm [shape: f32[2,32,256], index: 2, kind: input, shape index: {}]   ;;  %s2595_s3 = inlined_call_operand.hbm [shape: f32[2,32,256], index: 3, kind: output, shape index: {}]  }
   0x1   :  { %2625 = sst [smem:[#allocation41_spill]] %s2593_s1 }
   0x2   :  { %8 = vsyncpa [#allocation6], 0 }
   0x3   :  { %10 = vsyncpa [#allocation6 + $0x1], 0 }
   0x4   :  { %11 = vsyncpa [#allocation9], 0 }
   0x5   :  { %13 = vsyncpa [#allocation9 + $0x1], 0 }
   0x6   :  { %14 = vsyncpa [#allocation7], 0 }
   0x7   :  { %16 = vsyncpa [#allocation7 + $0x1], 0  ;;  %s1756_s12 = smov 0   ;;  %s1758_s13 = smov 0  }
   0x8   :  { %s1760_s14 = smov 0   ;;  %s1762_s15 = smov 0  }
   0x9   :  { %s1764_s16 = smov 0   ;;  %s1766_s17 = smov 0  }
   0xa LB: > { %2626 = sst [smem:[#allocation15_spill]] %s1718_s16  ;;  %s1787_s18 = sadd.s32 4294967295, %s1722_s17   ;;  %s1722_s17 = sphi %s1766_s17, %s22_s17   ;;  %s1718_s16 = sphi %s1764_s16, %s2690_s16   ;;  %s1714_s15 = sphi %s1762_s15, %s2689_s15   ;;  %s1710_s14 = sphi %s1760_s14, %s2693_s14   ;;  %s1706_s13 = sphi %s1758_s13, %s2692_s13   ;;  %s1702_s12 = sphi %s1756_s12, %s2691_s12  }
   0xb   : > { %s1300_s19 = sadd.s32 4294967294, %s1722_s17   ;;  %s41_s20 = sadd.s32 1, %s1718_s16 }
   0xc   : > { %s50_s21 = sadd.s32 1, %s1710_s14  ;;  %p43_p0 = scmp.ge.s32.totalorder %s41_s20, 2 }
   0xd   : > { %p57_p1 = scmp.ne.s32.totalorder %s1710_s14, %s1706_s13  ;;  %p58_p2 = scmp.eq.s32.totalorder %s1722_s17, 0 }
   0xe   : > { %p63_p3 = scmp.ne.s32.totalorder %s1706_s13, %s1702_s12  ;;  %s2695_s20 = smov (%p43_p0, %s41_s20), 0 }
   0xf   : > { %2627 = sst [smem:[#allocation16_spill]] %s2695_s20  ;;  %p1799_p4 = por %p58_p2, %p57_p1 }
  0x10   : > { %p64_p5 = scmp.eq.s32.totalorder %s1787_s18, 0  ;;  %s45_s23 = ssub.s32 %s1718_s16, %s2695_s20 }
  0x11   : > { %p145_p6 = scmp.eq.s32.totalorder %s1787_s18, 1  ;;  %p48_p7 = scmp.eq.s32.totalorder %s45_s23, 0 }
  0x12   : > { %p1807_p8 = por %p64_p5, %p63_p3  ;;  %p151_p10 = scmp.eq.s32.totalorder %s1300_s19, 1 }
  0x13   : > { %p1811_p9 = por %p145_p6, %p57_p1  ;;  %p1364_p13 = scmp.lt.s32.totalorder %s1722_s17, 2 }
  0x14   : > { %s1816_s26 = scalar_select %p48_p7, %s1710_s14, %s50_s21  }
  0x15   : > { %p1818_p11 = por %p151_p10, %p63_p3  ;;  %s2596_s28 = sand.u32 1, %s1710_s14  }
  0x16   : > { %2631 = sst [smem:[#allocation17_spill]] %s1816_s26  ;;  %s1827_s29 = sshll.u32 %s2596_s28, 6 }
  0x17   : > { %s1830_s30 = sshll.u32 %s1718_s16, 10  ;;  %p1834_p0 = pnand %p1364_p13, %p1799_p4 }
  0x18   : > { %s194_s5 = sand.u32 1, %s1722_s17   ;;  %s2634_s1 = sld [smem:[#allocation41_spill]] }
  0x19   : > { %s198_s9 = scalar_lea.vmem [#allocation8], %s1827_s29  ;;  %p1312_p1 = scmp.ge.s32.totalorder %s1722_s17, 1 }
  0x1a   : > { %s207_s10 = sshll.u32 %s198_s9, 4  ;;  %p238_p2 = scmp.lt.s32.totalorder %s1722_s17, 3  ;;  %s208_s10 = int_to_ptr.vmem [resolvable:$true] %s207_s10 }
  0x1b   : > { %s1846_s11 = scalar_lea.sflag [#allocation9], %s194_s5  ;;  %p1556_p3 = pneg %p1834_p0 }
  0x1c   : > { %s1567_s19 = scalar_lea.vmem %s208_s10, 1024  ;;  %s1724_s21 = smov [#allocation8]  }
  0x1d   : > { %p1568_p4 = scmp.ne.s32.totalorder %s208_s10, %s1567_s19  ;;  %s1572_s22 = sshll.u32 %s1724_s21, 4  ;;  %s1573_s22 = int_to_ptr.vmem [resolvable:$false] %s1572_s22 }
  0x1e   : > { %s206_s8 = scalar_lea.hbm %s2634_s1, %s1830_s30  ;;  %s1574_s23 = scalar_lea.vmem %s1573_s22, 2048 }
  0x1f   : > { %p1570_p5 = pnand %p1568_p4, %p1556_p3  ;;  %p1575_p7 = scmp.lt.s32.totalorder %s208_s10, %s1573_s22 }
  0x20   : > { %p1576_p10 = scmp.lt.s32.totalorder %s1574_s23, %s1567_s19 }
  0x21   : > { %p1571_p6 = pneg %p1570_p5 }
  0x22   : > { %p1577_p13 = por %p1576_p10, %p1575_p7 }
  0x24   : > { %p1578_p12 = pnand %p1577_p13, %p1571_p6 }
  0x26   : > { %1581 = shalt.err (!%p1578_p12)
}
  0x27   : > { %s2599_s6 = smov 256   ;;  %s1726_s5 = smov 16  }
  0x28   : > { %1356 = dma.hbm_to_vmem [thread:$0]  (!%p1834_p0), %s206_s8, 1024, %s208_s10, %s1846_s11, %s2599_s6, %s2599_s6, %s1726_s5  }
  0x29   : > { %p1863_p4 = pnand %p1312_p1, %p238_p2  ;;  %s183_s21 = scalar_lea.hbm %s2592_s0, %s1830_s30 }
  0x2a   : > { %s175_s22 = scalar_lea.vmem [#allocation5], %s1827_s29  ;;  %s229_s20 = scalar_lea.hbm %s2594_s2, %s1830_s30 }
  0x2b   : > { %s184_s23 = sshll.u32 %s175_s22, 4  ;;  %s2636_s16 = sand.u32 1, %s1710_s14   ;;  %s185_s23 = int_to_ptr.vmem [resolvable:$true] %s184_s23 }
  0x2c   : > { %s172_s26 = scalar_lea.sflag [#allocation6], %s2636_s16  ;;  %s1595_s8 = scalar_lea.vmem %s185_s23, 1024 }
  0x2d   : > { %p1596_p12 = scmp.ne.s32.totalorder %s185_s23, %s1595_s8  ;;  %s1727_s10 = smov [#allocation5]  }
  0x2e   : > { %s1600_s6 = sshll.u32 %s1727_s10, 4  ;;  %s1601_s6 = int_to_ptr.vmem [resolvable:$false] %s1600_s6 }
  0x2f   : > { %p1598_p1 = pnand %p1596_p12, %p1556_p3  ;;  %s1602_s9 = scalar_lea.vmem %s1601_s6, 2048 }
  0x30   : > { %p1603_p5 = scmp.lt.s32.totalorder %s185_s23, %s1601_s6  ;;  %p1604_p6 = scmp.lt.s32.totalorder %s1602_s9, %s1595_s8 }
  0x31   : > { %p1599_p2 = pneg %p1598_p1 }
  0x32   : > { %p1605_p7 = por %p1604_p6, %p1603_p5 }
  0x34   : > { %p1606_p10 = pnand %p1605_p7, %p1599_p2 }
  0x36   : > { %1609 = shalt.err (!%p1606_p10)
}
  0x37   : > { %s2637_s1 = smov 256   ;;  %s221_s16 = scalar_lea.vmem [#allocation10], %s1827_s29 }
  0x38   : > { %1353 = dma.hbm_to_vmem [thread:$0]  (!%p1834_p0), %s183_s21, 1024, %s185_s23, %s172_s26, %s2637_s1, %s2637_s1, %s1726_s5  }
  0x39   : > { %s230_s28 = sshll.u32 %s221_s16, 4  ;;  %s1728_s6 = smov [#allocation10]   ;;  %s231_s28 = int_to_ptr.vmem [resolvable:$true] %s230_s28 }
  0x3a   : > { %s1623_s19 = scalar_lea.vmem %s231_s28, 1024  ;;  %s1628_s22 = sshll.u32 %s1728_s6, 4  ;;  %s1629_s22 = int_to_ptr.vmem [resolvable:$false] %s1628_s22 }
  0x3b   : > { %p1624_p13 = scmp.ne.s32.totalorder %s231_s28, %s1623_s19  ;;  %s1630_s8 = scalar_lea.vmem %s1629_s22, 2048 }
  0x3c   : > { %p1631_p2 = scmp.lt.s32.totalorder %s231_s28, %s1629_s22  ;;  %p1632_p5 = scmp.lt.s32.totalorder %s1630_s8, %s1623_s19 }
  0x3d   : > { %p1626_p12 = pnand %p1624_p13, %p1556_p3 }
  0x3e   : > { %p1633_p6 = por %p1632_p5, %p1631_p2 }
  0x3f   : > { %p1627_p1 = pneg %p1626_p12 }
  0x41   : > { %p1634_p7 = pnand %p1633_p6, %p1627_p1 }
  0x43   : > { %1637 = shalt.err (!%p1634_p7)
}
  0x44   : > { %1359 = dma.hbm_to_vmem [thread:$0]  (!%p1834_p0), %s229_s20, 1024, %s231_s28, %s1846_s11, %s2637_s1, %s2637_s1, %s1726_s5  }
  0x45   : > { %242 = sbr.rel (%p1863_p4) target bundleno = 866 (0x362), region = 32 }
  0x4a   : > { %s1904_s21 = sand.u32 1, %s1706_s13  }
  0x4b   : > { %s1907_s4 = sshll.u32 %s1904_s21, 6  ;;  %s245_s23 = scalar_lea.sflag [#allocation6], %s1904_s21 }
  0x4c   : > { %s1911_s10 = scalar_lea.vmem [#allocation5], %s1907_s4 }
  0x4d   : > { %1689 = dma.done.wait (%p1807_p8), %s245_s23, 1024  }
  0x4e   : > { %1691 = vsyncadd (%p1807_p8), %s245_s23, 4294966272  ;;  %s253_s20 = sand.u32 1, %s1787_s18   ;;  %s257_s11 = scalar_lea.vmem [#allocation8], %s1907_s4 }
  0x4f   : > { %s254_s30 = scalar_lea.sflag [#allocation9], %s253_s20 }
  0x50   : > { %1693 = dma.done.wait (%p1807_p8), %s254_s30, 2048  }
  0x51   : > { %1695 = vsyncadd (%p1807_p8), %s254_s30, 4294965248  ;;  %v1729_v0 = vmov 0   ;;  %v342_v1 = vld [vmem:[%s257_s11] sm:$0xff]  ;;  %v344_v2 = vld [vmem:[%s257_s11 + $0x10] sm:$0xff]  ;;  %vm398_vm0 = vcmask 261120   ;;  %v2601_v55 = vlaneseq  ;;  %v1730_v58 = vmov -inf  }
  0x52   : > { %479 = vmatprep.mubr.bf16.mxu0 %v1729_v0  ;;  %v346_v3 = vld [vmem:[%s257_s11 + $0x20] sm:$0xff]  ;;  %v350_v4 = vpack.c.bf16 %v344_v2, %v342_v1  ;;  %v348_v5 = vld [vmem:[%s257_s11 + $0x30] sm:$0xff]  ;;  %v343_v6 = vld [vmem:[%s257_s11 + $0x8] sm:$0xff]  ;;  %v1731_v59 = vmov 0.0   ;;  %s2175_s18 = scalar_lea.vmem [#allocation10], %s1907_s4  ;;  %s298_s24 = scalar_lea.vmem [#allocation11], %s1907_s4 }
  0x53   : > { %v345_v7 = vld [vmem:[%s257_s11 + $0x18] sm:$0xff]  ;;  %v347_v9 = vld [vmem:[%s257_s11 + $0x28] sm:$0xff]  ;;  %v352_v12 = vpack.c.bf16 %v348_v5, %v346_v3  ;;  %v326_v15 = vld [vmem:[%s1911_s10 + $0x20] sm:$0xff]  ;;  %vm1978_vm1 = vcmp.lt.s32.totalorder %v2601_v55, 256  ;;  %s1160_s5 = sshll.u32 %s298_s24, 4  ;;  %s1341_s7 = sshll.u32 %s1714_s15, 10  ;;  %s2539_s5 = int_to_ptr.vmem [resolvable:$true] %s1160_s5 }
  0x54   : > { %v351_v8 = vpack.c.bf16 %v345_v7, %v343_v6  ;;  %v349_v10 = vld [vmem:[%s257_s11 + $0x38] sm:$0xff]  ;;  %v327_v11 = vld [vmem:[%s1911_s10 + $0x28] sm:$0xff]  ;;  %354 = vxpose.xlu0.c.b16.start [1/2] (short) %v350_v4, 128  ;;  %v328_v16 = vld [vmem:[%s1911_s10 + $0x30] sm:$0xff]  ;;  %v334_v19 = vmul.f32 0.25503486, %v326_v15  ;;  %s2544_s16 = scalar_lea.hbm %s2595_s3, %s1341_s7  ;;  %s1145_s28 = scalar_lea.sflag [#allocation7], %s1904_s21 }
  0x55   : > { %v329_v13 = vld [vmem:[%s1911_s10 + $0x38] sm:$0xff]  ;;  %v335_v14 = vmul.f32 0.25503486, %v327_v11  ;;  %v353_v17 = vpack.c.bf16 %v349_v10, %v347_v9  ;;  %v336_v20 = vmul.f32 0.25503486, %v328_v16  ;;  %v323_v21 = vld [vmem:[%s1911_s10 + $0x8] sm:$0xff] }
  0x56   : > { %370 = vxpose.xlu1.c.b16.start [1/2] (short) %v351_v8, 128  ;;  %v337_v18 = vmul.f32 0.25503486, %v329_v13  ;;  %v325_v22 = vld [vmem:[%s1911_s10 + $0x18] sm:$0xff]  ;;  %v322_v23 = vld [vmem:[%s1911_s10] sm:$0xff]  ;;  %v331_v26 = vmul.f32 0.25503486, %v323_v21 }
  0x57   : > { %v340_v25 = vpack.c.bf16 %v336_v20, %v334_v19  ;;  %v333_v27 = vmul.f32 0.25503486, %v325_v22  ;;  %v324_v28 = vld [vmem:[%s1911_s10 + $0x10] sm:$0xff]  ;;  %v330_v29 = vmul.f32 0.25503486, %v322_v23  ;;  %v393_v57 = vld [vmem:[%s2175_s18 + $0x38] sm:$0xff] }
  0x58   : > { %v341_v24 = vpack.c.bf16 %v337_v18, %v335_v14  ;;  %355 = vxpose.xlu0.c.b16.end [2/2] (short) %v352_v12, 128  ;;  %v332_v30 = vmul.f32 0.25503486, %v324_v28  ;;  %312 = vst.msk [vmem:[#allocation2] sm:$0x3] %vm1978_vm1, %v1730_v58  ;;  %313 = vst.msk [vmem:[#allocation3] sm:$0x3] %vm1978_vm1, %v1731_v59 }
  0x59   : > { %v339_v31 = vpack.c.bf16 %v333_v27, %v331_v26  ;;  %s1638_s19 = scalar_lea.vmem %s2539_s5, 1024  ;;  %s1733_s15 = smov [#allocation11]  }
  0x5a   : > { %371 = vxpose.xlu1.c.b16.end [2/2] (short) %v353_v17, 128  ;;  %459 = vmatprep.subr.bf16.mxu0 %v341_v24  ;;  %v338_v32 = vpack.c.bf16 %v332_v30, %v330_v29  ;;  %p1639_p8 = scmp.ne.s32.totalorder %s2539_s5, %s1638_s19  ;;  %s1642_s6 = sshll.u32 %s1733_s15, 4  ;;  %s1643_s6 = int_to_ptr.vmem [resolvable:$false] %s1642_s6 }
  0x5b   : > { %460 = vmatpush1.bf16.msra.mxu0 %v340_v25  ;;  %s1644_s22 = scalar_lea.vmem %s1643_s6, 2048  ;;  %p1645_p4 = scmp.lt.s32.totalorder %s2539_s5, %s1643_s6 }
  0x5c   : > { %461 = vmatprep.subr.bf16.mxu0 %v339_v31  ;;  %p1640_p0 = pnand %p1639_p8, %p1811_p9  ;;  %p1646_p10 = scmp.lt.s32.totalorder %s1644_s22, %s1638_s19 }
  0x5e   : > { %p1641_p3 = pneg %p1640_p0  ;;  %p1647_p13 = por %p1646_p10, %p1645_p4 }
  0x5f   : > { %462 = vmatpush1.bf16.msra.mxu0 %v338_v32 }
  0x60   : > { %p1648_p12 = pnand %p1647_p13, %p1641_p3 }
  0xb6   : > { %v362_v33 = vpop.trf.xlu0 }
  0xb7   : > { %1317 = vmatmul.mubr.msk.bf16.vlgmr.msra.gmra.mxu0 %vm398_vm0, %v362_v33 }
  0xb8   : > { %489 = vmatprep.mubr.bf16.mxu0 %v1729_v0  ;;  %v378_v41 = vpop.trf.xlu1 }
  0xba   : > { %v363_v34 = vpop.trf.xlu0 }
  0xbc   : > { %v379_v42 = vpop.trf.xlu1 }
  0xbe   : > { %v364_v35 = vpop.trf.xlu0 }
  0xbf   : > { %1318 = vmatmul.mubr.msk.bf16.gmra.mxu0 %vm398_vm0, %v363_v34 }
  0xc0   : > { %499 = vmatprep.mubr.bf16.mxu0 %v1729_v0  ;;  %v380_v43 = vpop.trf.xlu1 }
  0xc2   : > { %v365_v36 = vpop.trf.xlu0 }
  0xc4   : > { %v381_v44 = vpop.trf.xlu1 }
  0xc6   : > { %v366_v37 = vpop.trf.xlu0 }
  0xc7   : > { %1319 = vmatmul.mubr.msk.bf16.gmra.mxu0 %vm398_vm0, %v364_v35 }
  0xc8   : > { %509 = vmatprep.mubr.bf16.mxu0 %v1729_v0  ;;  %v382_v45 = vpop.trf.xlu1 }
  0xca   : > { %v367_v38 = vpop.trf.xlu0 }
  0xcc   : > { %v383_v46 = vpop.trf.xlu1 }
  0xce   : > { %v368_v39 = vpop.trf.xlu0 }
  0xcf   : > { %1320 = vmatmul.mubr.msk.bf16.gmra.mxu0 %vm398_vm0, %v365_v36 }
  0xd0   : > { %519 = vmatprep.mubr.bf16.mxu0 %v1729_v0  ;;  %v384_v47 = vpop.trf.xlu1 }
  0xd2   : > { %v369_v40 = vpop.trf.xlu0 }
  0xd4   : > { %v385_v48 = vpop.trf.xlu1 }
  0xd7   : > { %1321 = vmatmul.mubr.msk.bf16.gmra.mxu0 %vm398_vm0, %v366_v37 }
  0xd8   : > { %529 = vmatprep.mubr.bf16.mxu0 %v1729_v0 }
  0xdf   : > { %1322 = vmatmul.mubr.msk.bf16.gmra.mxu0 %vm398_vm0, %v367_v38 }
  0xe0   : > { %539 = vmatprep.mubr.bf16.mxu0 %v1729_v0 }
  0xe7   : > { %1323 = vmatmul.mubr.msk.bf16.gmra.mxu0 %vm398_vm0, %v368_v39 }
  0xe8   : > { %549 = vmatprep.mubr.bf16.mxu0 %v1729_v0 }
  0xef   : > { %1324 = vmatmul.mubr.msk.bf16.gmra.mxu0 %vm398_vm0, %v369_v40 }
  0xf0   : > { %559 = vmatprep.mubr.bf16.mxu0 %v1729_v0 }
  0xf7   : > { %1325 = vmatmul.mubr.msk.bf16.gmra.mxu0 %vm398_vm0, %v378_v41 }
  0xf8   : > { %569 = vmatprep.mubr.bf16.mxu0 %v1729_v0 }
  0xff   : > { %1326 = vmatmul.mubr.msk.bf16.gmra.mxu0 %vm398_vm0, %v379_v42 }
 0x100   : > { %579 = vmatprep.mubr.bf16.mxu0 %v1729_v0 }
 0x107   : > { %1327 = vmatmul.mubr.msk.bf16.gmra.mxu0 %vm398_vm0, %v380_v43 }
 0x108   : > { %589 = vmatprep.mubr.bf16.mxu0 %v1729_v0 }
 0x10f   : > { %1328 = vmatmul.mubr.msk.bf16.gmra.mxu0 %vm398_vm0, %v381_v44 }
 0x110   : > { %599 = vmatprep.mubr.bf16.mxu0 %v1729_v0 }
 0x117   : > { %1329 = vmatmul.mubr.msk.bf16.gmra.mxu0 %vm398_vm0, %v382_v45 }
 0x118   : > { %609 = vmatprep.mubr.bf16.mxu0 %v1729_v0 }
 0x11f   : > { %1330 = vmatmul.mubr.msk.bf16.gmra.mxu0 %vm398_vm0, %v383_v46 }
 0x120   : > { %619 = vmatprep.mubr.bf16.mxu0 %v1729_v0 }
 0x127   : > { %1331 = vmatmul.mubr.msk.bf16.gmra.mxu0 %vm398_vm0, %v384_v47 }
 0x128   : > { %629 = vmatprep.mubr.bf16.mxu0 %v1729_v0 }
 0x12f   : > { %1332 = vmatmul.mubr.msk.bf16.gmra.mxu0 %vm398_vm0, %v385_v48 }
 0x177   : > { %v1963_v49 = vpop.f32.mrf.mxu0 }
 0x179   : > { %v1965_v50 = vpop.f32.mrf.mxu0 }
 0x17b   : > { %v1967_v51 = vpop.f32.mrf.mxu0 }
 0x17d   : > { %v1969_v52 = vpop.f32.mrf.mxu0 }
 0x17f   : > { %v1971_v53 = vpop.f32.mrf.mxu0 }
 0x180   : > { %v641_v38 = vmax.f32 %v1963_v49, %v1971_v53 }
 0x181   : > { %v1973_v54 = vpop.f32.mrf.mxu0 }
 0x182   : > { %v678_v41 = vmax.f32 %v1965_v50, %v1973_v54 }
 0x183   : > { %v1975_v56 = vpop.f32.mrf.mxu0 }
 0x184   : > { %v642_v39 = vmax.f32 %v1967_v51, %v1975_v56 }
 0x185   : > { %v1986_v60 = vpop.f32.mrf.mxu0 }
 0x186   : > { %2640 = vst [vmem:[#allocation18_spill] sm:$0xff] %v1986_v60  ;;  %v679_v42 = vmax.f32 %v1969_v52, %v1986_v60 }
 0x187   : > { %v1988_v61 = vpop.f32.mrf.mxu0 }
 0x188   : > { %v643_v43 = vmax.f32 %v641_v38, %v1988_v61 }
 0x189   : > { %v1990_v62 = vpop.f32.mrf.mxu0 }
 0x18a   : > { %v680_v46 = vmax.f32 %v678_v41, %v1990_v62 }
 0x18b   : > { %v1992_v63 = vpop.f32.mrf.mxu0 }
 0x18c   : > { %2641 = vst [vmem:[#allocation19_spill] sm:$0xff] %v1992_v63  ;;  %v644_v44 = vmax.f32 %v642_v39, %v1992_v63 }
 0x18d   : > { %v1994_v0 = vpop.f32.mrf.mxu0 }
 0x18e   : > { %v681_v47 = vmax.f32 %v679_v42, %v1994_v0 }
 0x18f   : > { %v1996_v1 = vpop.f32.mrf.mxu0 }
 0x190   : > { %v645_v48 = vmax.f32 %v643_v43, %v1996_v1 }
 0x191   : > { %v1998_v2 = vpop.f32.mrf.mxu0 }
 0x192   : > { %v682_v55 = vmax.f32 %v680_v46, %v1998_v2 }
 0x193   : > { %v2000_v3 = vpop.f32.mrf.mxu0 }
 0x194   : > { %2642 = vst [vmem:[#allocation20_spill] sm:$0xff] %v2000_v3  ;;  %v646_v58 = vmax.f32 %v644_v44, %v2000_v3 }
 0x195   : > { %v2002_v4 = vpop.f32.mrf.mxu0 }
 0x196   : > { %v683_v60 = vmax.f32 %v681_v47, %v2002_v4 }
 0x197   : > { %v2004_v5 = vpop.f32.mrf.mxu0 }
 0x198   : > { %v647_v38 = vmax.f32 %v645_v48, %v2004_v5 }
 0x199   : > { %v2006_v6 = vpop.f32.mrf.mxu0 }
 0x19a   : > { %v684_v41 = vmax.f32 %v682_v55, %v2006_v6 }
 0x19b   : > { %v2008_v7 = vpop.f32.mrf.mxu0 }
 0x19c   : > { %2643 = vst [vmem:[#allocation21_spill] sm:$0xff] %v2008_v7  ;;  %v648_v39 = vmax.f32 %v646_v58, %v2008_v7 }
 0x19d   : > { %v2010_v8 = vpop.f32.mrf.mxu0 }
 0x19e   : > { %v685_v42 = vmax.f32 %v683_v60, %v2010_v8 }
 0x19f   : > { %v2012_v9 = vpop.f32.mrf.mxu0 }
 0x1a0   : > { %v649_v43 = vmax.f32 %v647_v38, %v2012_v9 }
 0x1a1   : > { %v2014_v10 = vpop.f32.mrf.mxu0 }
 0x1a2   : > { %v686_v46 = vmax.f32 %v684_v41, %v2014_v10 }
 0x1a3   : > { %v2016_v11 = vpop.f32.mrf.mxu0 }
 0x1a4   : > { %2644 = vst [vmem:[#allocation22_spill] sm:$0xff] %v2016_v11  ;;  %v650_v44 = vmax.f32 %v648_v39, %v2016_v11 }
 0x1a5   : > { %v2018_v12 = vpop.f32.mrf.mxu0 }
 0x1a6   : > { %v687_v47 = vmax.f32 %v685_v42, %v2018_v12 }
 0x1a7   : > { %v2020_v13 = vpop.f32.mrf.mxu0 }
 0x1a8   : > { %v651_v48 = vmax.f32 %v649_v43, %v2020_v13 }
 0x1a9   : > { %v2022_v14 = vpop.f32.mrf.mxu0 }
 0x1aa   : > { %v688_v55 = vmax.f32 %v686_v46, %v2022_v14 }
 0x1ab   : > { %v2024_v15 = vpop.f32.mrf.mxu0 }
 0x1ac   : > { %2645 = vst [vmem:[#allocation23_spill] sm:$0xff] %v2024_v15  ;;  %v652_v58 = vmax.f32 %v650_v44, %v2024_v15 }
 0x1ad   : > { %v2026_v16 = vpop.f32.mrf.mxu0 }
 0x1ae   : > { %v689_v60 = vmax.f32 %v687_v47, %v2026_v16 }
 0x1af   : > { %v2028_v17 = vpop.f32.mrf.mxu0 }
 0x1b0   : > { %v653_v38 = vmax.f32 %v651_v48, %v2028_v17 }
 0x1b1   : > { %v2030_v18 = vpop.f32.mrf.mxu0 }
 0x1b2   : > { %v690_v41 = vmax.f32 %v688_v55, %v2030_v18 }
 0x1b3   : > { %v2032_v19 = vpop.f32.mrf.mxu0 }
 0x1b4   : > { %2646 = vst [vmem:[#allocation24_spill] sm:$0xff] %v2032_v19  ;;  %v654_v39 = vmax.f32 %v652_v58, %v2032_v19 }
 0x1b5   : > { %v2034_v20 = vpop.f32.mrf.mxu0 }
 0x1b6   : > { %v691_v42 = vmax.f32 %v689_v60, %v2034_v20 }
 0x1b7   : > { %v2036_v21 = vpop.f32.mrf.mxu0 }
 0x1b8   : > { %v655_v43 = vmax.f32 %v653_v38, %v2036_v21 }
 0x1b9   : > { %v2038_v22 = vpop.f32.mrf.mxu0 }
 0x1ba   : > { %v692_v46 = vmax.f32 %v690_v41, %v2038_v22 }
 0x1bb   : > { %v2040_v23 = vpop.f32.mrf.mxu0 }
 0x1bc   : > { %2647 = vst [vmem:[#allocation25_spill] sm:$0xff] %v2040_v23  ;;  %v656_v44 = vmax.f32 %v654_v39, %v2040_v23 }
 0x1bd   : > { %v2042_v24 = vpop.f32.mrf.mxu0 }
 0x1be   : > { %v693_v47 = vmax.f32 %v691_v42, %v2042_v24 }
 0x1bf   : > { %v2044_v25 = vpop.f32.mrf.mxu0 }
 0x1c0   : > { %v657_v48 = vmax.f32 %v655_v43, %v2044_v25 }
 0x1c1   : > { %v2046_v26 = vpop.f32.mrf.mxu0 }
 0x1c2   : > { %v694_v55 = vmax.f32 %v692_v46, %v2046_v26 }
 0x1c3   : > { %v2048_v27 = vpop.f32.mrf.mxu0 }
 0x1c4   : > { %2648 = vst [vmem:[#allocation26_spill] sm:$0xff] %v2048_v27  ;;  %v658_v58 = vmax.f32 %v656_v44, %v2048_v27 }
 0x1c5   : > { %v2050_v28 = vpop.f32.mrf.mxu0 }
 0x1c6   : > { %v695_v60 = vmax.f32 %v693_v47, %v2050_v28 }
 0x1c7   : > { %v2052_v29 = vpop.f32.mrf.mxu0 }
 0x1c8   : > { %v659_v38 = vmax.f32 %v657_v48, %v2052_v29 }
 0x1c9   : > { %v2054_v30 = vpop.f32.mrf.mxu0 }
 0x1ca   : > { %v696_v41 = vmax.f32 %v694_v55, %v2054_v30 }
 0x1cb   : > { %v2056_v31 = vpop.f32.mrf.mxu0 }
 0x1cc   : > { %2649 = vst [vmem:[#allocation27_spill] sm:$0xff] %v2056_v31  ;;  %v660_v39 = vmax.f32 %v658_v58, %v2056_v31 }
 0x1cd   : > { %v2058_v32 = vpop.f32.mrf.mxu0 }
 0x1ce   : > { %v697_v42 = vmax.f32 %v695_v60, %v2058_v32 }
 0x1cf   : > { %v2060_v33 = vpop.f32.mrf.mxu0 }
 0x1d0   : > { %v661_v43 = vmax.f32 %v659_v38, %v2060_v33 }
 0x1d1   : > { %v2062_v34 = vpop.f32.mrf.mxu0 }
 0x1d2   : > { %v698_v46 = vmax.f32 %v696_v41, %v2062_v34 }
 0x1d3   : > { %v2064_v35 = vpop.f32.mrf.mxu0 }
 0x1d4   : > { %2650 = vst [vmem:[#allocation28_spill] sm:$0xff] %v2064_v35  ;;  %v662_v44 = vmax.f32 %v660_v39, %v2064_v35 }
 0x1d5   : > { %v2066_v36 = vpop.f32.mrf.mxu0 }
 0x1d6   : > { %v699_v47 = vmax.f32 %v697_v42, %v2066_v36 }
 0x1d7   : > { %v2068_v37 = vpop.f32.mrf.mxu0 }
 0x1d8   : > { %v663_v48 = vmax.f32 %v661_v43, %v2068_v37 }
 0x1d9   : > { %v2074_v40 = vpop.f32.mrf.mxu0 }
 0x1da   : > { %v700_v55 = vmax.f32 %v698_v46, %v2074_v40 }
 0x1db   : > { %v2082_v45 = vpop.f32.mrf.mxu0 }
 0x1dc   : > { %2651 = vst [vmem:[#allocation29_spill] sm:$0xff] %v2082_v45  ;;  %v664_v58 = vmax.f32 %v662_v44, %v2082_v45 }
 0x1dd   : > { %v2088_v59 = vpop.f32.mrf.mxu0 }
 0x1de   : > { %2652 = vst [vmem:[#allocation30_spill] sm:$0xff] %v2088_v59  ;;  %v701_v60 = vmax.f32 %v699_v47, %v2088_v59 }
 0x1df   : > { %v2094_v63 = vpop.f32.mrf.mxu0 }
 0x1e0   : > { %2653 = vst [vmem:[#allocation31_spill] sm:$0xff] %v2094_v63  ;;  %v665_v38 = vmax.f32 %v663_v48, %v2094_v63 }
 0x1e1   : > { %v2100_v3 = vpop.f32.mrf.mxu0 }
 0x1e2   : > { %2654 = vst [vmem:[#allocation32_spill] sm:$0xff] %v2100_v3  ;;  %v702_v41 = vmax.f32 %v700_v55, %v2100_v3 }
 0x1e3   : > { %v2106_v7 = vpop.f32.mrf.mxu0 }
 0x1e4   : > { %2655 = vst [vmem:[#allocation33_spill] sm:$0xff] %v2106_v7  ;;  %v666_v39 = vmax.f32 %v664_v58, %v2106_v7 }
 0x1e5   : > { %v2112_v11 = vpop.f32.mrf.mxu0 }
 0x1e6   : > { %2656 = vst [vmem:[#allocation34_spill] sm:$0xff] %v2112_v11  ;;  %v703_v42 = vmax.f32 %v701_v60, %v2112_v11 }
 0x1e7   : > { %v2118_v15 = vpop.f32.mrf.mxu0 }
 0x1e8   : > { %2657 = vst [vmem:[#allocation35_spill] sm:$0xff] %v2118_v15  ;;  %v667_v43 = vmax.f32 %v665_v38, %v2118_v15 }
 0x1e9   : > { %v2124_v19 = vpop.f32.mrf.mxu0 }
 0x1ea   : > { %2658 = vst [vmem:[#allocation36_spill] sm:$0xff] %v2124_v19  ;;  %v704_v46 = vmax.f32 %v702_v41, %v2124_v19  ;;  %v1732_v41 = vmov 1966171168  }
 0x1eb   : > { %v2130_v23 = vpop.f32.mrf.mxu0  ;;  %v719_v19 = vunpack.c.l.s4 %v1732_v41 }
 0x1ec   : > { %2659 = vst [vmem:[#allocation37_spill] sm:$0xff] %v2130_v23  ;;  %v668_v44 = vmax.f32 %v666_v39, %v2130_v23 }
 0x1ed   : > { %v2136_v27 = vpop.f32.mrf.mxu0 }
 0x1ee   : > { %2660 = vst [vmem:[#allocation38_spill] sm:$0xff] %v2136_v27  ;;  %v705_v47 = vmax.f32 %v703_v42, %v2136_v27  ;;  %v2663_v27 = vlaneseq }
 0x1ef   : > { %v2142_v31 = vpop.f32.mrf.mxu0 }
 0x1f0   : > { %2661 = vst [vmem:[#allocation39_spill] sm:$0xff] %v2142_v31  ;;  %v669_v48 = vmax.f32 %v667_v43, %v2142_v31  ;;  %v722_v59 = vshrl.u32 %v2663_v27, 7 }
 0x1f1   : > { %v2148_v35 = vpop.f32.mrf.mxu0 }
 0x1f2   : > { %v706_v55 = vmax.f32 %v704_v46, %v2148_v35 }
 0x1f3   : > { %v2154_v45 = vpop.f32.mrf.mxu0 }
 0x1f4   : > { %2662 = vst [vmem:[#allocation40_spill] sm:$0xff] %v2154_v45  ;;  %v670_v58 = vmax.f32 %v668_v44, %v2154_v45  ;;  %v720_v45 = vunpack.c.0.s8 %v719_v19  ;;  %v389_v19 = vld [vmem:[%s2175_s18 + $0x18] sm:$0xff] }
 0x1f5   : > { %v2160_v7 = vpop.f32.mrf.mxu0 }
 0x1f6   : > { %v671_v3 = vmax.f32 %v669_v48, %v670_v58  ;;  %v707_v60 = vmax.f32 %v705_v47, %v2160_v7  ;;  %v2165_v47 = vsub.s32 %v720_v45, %v722_v59  ;;  %v2186_v45 = vsub.s32 1, %v722_v59 }
 0x1f8   : > { %v672_v38 = vrot.slane %v671_v3, 4  ;;  %v708_v15 = vmax.f32 %v706_v55, %v707_v60  ;;  %v2168_v60 = vld [vmem:[#allocation2] sm:$0x3] }
 0x1fa   : > { %v673_v39 = vmax.f32 %v671_v3, %v672_v38  ;;  %v709_v23 = vrot.slane %v708_v15, 4 }
 0x1fc   : > { %v674_v11 = vrot.slane %v673_v39, 2  ;;  %v710_v63 = vmax.f32 %v708_v15, %v709_v23 }
 0x1fe   : > { %v675_v42 = vmax.f32 %v673_v39, %v674_v11  ;;  %v711_v43 = vrot.slane %v710_v63, 2 }
 0x200   : > { %v676_v31 = vrot.slane %v675_v42, 1  ;;  %v712_v44 = vmax.f32 %v710_v63, %v711_v43  ;;  %v387_v63 = vld [vmem:[%s2175_s18 + $0x8] sm:$0xff] }
 0x201   : > { %v395_v27 = vpack.c.bf16 %v389_v19, %v387_v63  ;;  %v2667_v63 = vld [vmem:[#allocation21_spill] sm:$0xff] }
 0x202   : > { %v713_v46 = vrot.slane %v712_v44, 1  ;;  %v677_v48 = vmax.f32 %v675_v42, %v676_v31  ;;  %v2184_v31 = vsub.s32 0, %v722_v59 }
 0x203   : > { %1066 = vmatprep.mubr.bf16.mxu1 %v395_v27 }
 0x204   : > { %v714_v58 = vmax.f32 %v712_v44, %v713_v46 }
 0x206   : > { %v717_v55 = vcombine.low %v677_v48, %v714_v58 }
 0x208   : > { %v724_v3 = vrot.slane %v717_v55, %v2165_v47  ;;  %v2666_v55 = vld [vmem:[#allocation20_spill] sm:$0xff] }
 0x20a   : > { %v731_v15 = vrot.slane %v724_v3, %v2165_v47 }
 0x20c   : > { %v2172_v11 = vmax.f32 %v2168_v60, %v731_v15 }
 0x20e   : > { %v734_v23 = vsub.f32 %v2168_v60, %v2172_v11  ;;  %1103 = vst.msk [vmem:[#allocation2] sm:$0x3] %vm1978_vm1, %v2172_v11  ;;  %v2190_v38 = vrot.slane %v2172_v11, %v2184_v31  ;;  %v2194_v39 = vrot.slane %v2172_v11, %v2186_v45 }
 0x210   : > { %v747_v41 = vsub.f32 %v1963_v49, %v2190_v38  ;;  %v748_v42 = vsub.f32 %v1965_v50, %v2194_v39  ;;  %v749_v43 = vsub.f32 %v1967_v51, %v2190_v38  ;;  %v750_v59 = vsub.f32 %v1969_v52, %v2194_v39  ;;  %v2664_v50 = vld [vmem:[#allocation18_spill] sm:$0xff] }
 0x211   : > { %v751_v44 = vsub.f32 %v1971_v53, %v2190_v38  ;;  %v752_v46 = vsub.f32 %v1973_v54, %v2194_v39  ;;  %v753_v49 = vsub.f32 %v1975_v56, %v2190_v38  ;;  %v754_v48 = vsub.f32 %v2664_v50, %v2194_v39  ;;  %v2665_v53 = vld [vmem:[#allocation19_spill] sm:$0xff] }
 0x212   : > { %1422 = vpow2.f32 %v747_v41  ;;  %v755_v51 = vsub.f32 %v1988_v61, %v2190_v38  ;;  %v756_v52 = vsub.f32 %v1990_v62, %v2194_v39  ;;  %v757_v54 = vsub.f32 %v2665_v53, %v2190_v38 }
 0x213   : > { %1424 = vpow2.f32 %v748_v42  ;;  %v758_v56 = vsub.f32 %v1994_v0, %v2194_v39  ;;  %v759_v58 = vsub.f32 %v1996_v1, %v2190_v38  ;;  %v760_v61 = vsub.f32 %v1998_v2, %v2194_v39 }
 0x214   : > { %1426 = vpow2.f32 %v749_v43  ;;  %v761_v62 = vsub.f32 %v2666_v55, %v2190_v38  ;;  %v762_v3 = vsub.f32 %v2002_v4, %v2194_v39  ;;  %v763_v0 = vsub.f32 %v2004_v5, %v2190_v38  ;;  %v2669_v55 = vld [vmem:[#allocation23_spill] sm:$0xff] }
 0x215   : > { %1428 = vpow2.f32 %v750_v59  ;;  %v764_v1 = vsub.f32 %v2006_v6, %v2194_v39  ;;  %v765_v19 = vsub.f32 %v2667_v63, %v2190_v38  ;;  %v766_v4 = vsub.f32 %v2010_v8, %v2194_v39 }
 0x216   : > { %1430 = vpow2.f32 %v751_v44  ;;  %v767_v41 = vsub.f32 %v2012_v9, %v2190_v38  ;;  %v768_v59 = vsub.f32 %v2014_v10, %v2194_v39  ;;  %v770_v10 = vsub.f32 %v2018_v12, %v2194_v39 }
 0x217   : > { %1432 = vpow2.f32 %v752_v46  ;;  %v2668_v46 = vld [vmem:[#allocation22_spill] sm:$0xff]  ;;  %v771_v53 = vsub.f32 %v2020_v13, %v2190_v38  ;;  %v775_v63 = vsub.f32 %v2028_v17, %v2190_v38 }
 0x218   : > { %1434 = vpow2.f32 %v753_v49  ;;  %v769_v49 = vsub.f32 %v2668_v46, %v2190_v38 }
 0x219   : > { %1436 = vpow2.f32 %v754_v48 }
 0x21a   : > { %1438 = vpow2.f32 %v755_v51 }
 0x21b   : > { %1440 = vpow2.f32 %v756_v52 }
 0x21c   : > { %1442 = vpow2.f32 %v757_v54 }
 0x21d   : > { %1444 = vpow2.f32 %v758_v56 }
 0x21e   : > { %1446 = vpow2.f32 %v759_v58  ;;  %v772_v58 = vsub.f32 %v2022_v14, %v2194_v39 }
 0x21f   : > { %v2230_v15 = vpop.eup %1422  ;;  %1448 = vpow2.f32 %v760_v61 }
 0x220   : > { %v2234_v2 = vpop.eup %1424  ;;  %1450 = vpow2.f32 %v761_v62  ;;  %v773_v62 = vsub.f32 %v2669_v55, %v2190_v38 }
 0x221   : > { %v2238_v27 = vpop.eup %1426  ;;  %1452 = vpow2.f32 %v762_v3 }
 0x222   : > { %v2242_v5 = vpop.eup %1428  ;;  %1454 = vpow2.f32 %v763_v0  ;;  %v877_v6 = vadd.f32 %v2238_v27, %v2230_v15  ;;  %v1002_v42 = vpack.c.bf16 %v2238_v27, %v2230_v15  ;;  %v774_v0 = vsub.f32 %v2026_v16, %v2194_v39 }
 0x223   : > { %v2250_v43 = vpop.eup %1430  ;;  %1456 = vpow2.f32 %v764_v1  ;;  %v914_v8 = vadd.f32 %v2242_v5, %v2234_v2  ;;  %v1003_v44 = vpack.c.bf16 %v2242_v5, %v2234_v2 }
 0x224   : > { %v2258_v9 = vpop.eup %1432  ;;  %1458 = vpow2.f32 %v765_v19  ;;  %v878_v50 = vadd.f32 %v2250_v43, %v877_v6 }
 0x225   : > { %v2263_v48 = vpop.eup %1434  ;;  %1460 = vpow2.f32 %v766_v4  ;;  %v915_v51 = vadd.f32 %v2258_v9, %v914_v8 }
 0x226   : > { %v2268_v52 = vpop.eup %1436  ;;  %1462 = vpow2.f32 %v767_v41  ;;  %v879_v54 = vadd.f32 %v2263_v48, %v878_v50  ;;  %v776_v41 = vsub.f32 %v2030_v18, %v2194_v39 }
 0x227   : > { %v2273_v56 = vpop.eup %1438  ;;  %1464 = vpow2.f32 %v768_v59  ;;  %v916_v61 = vadd.f32 %v2268_v52, %v915_v51  ;;  %v2670_v59 = vld [vmem:[#allocation24_spill] sm:$0xff] }
 0x228   : > { %v2278_v12 = vpop.eup %1440  ;;  %1466 = vpow2.f32 %v769_v49  ;;  %v880_v3 = vadd.f32 %v2273_v56, %v879_v54  ;;  %v777_v8 = vsub.f32 %v2670_v59, %v2190_v38  ;;  %v778_v49 = vsub.f32 %v2034_v20, %v2194_v39  ;;  %v2672_v59 = vld [vmem:[#allocation26_spill] sm:$0xff] }
 0x229   : > { %v2283_v13 = vpop.eup %1442  ;;  %1468 = vpow2.f32 %v770_v10  ;;  %v917_v1 = vadd.f32 %v2278_v12, %v916_v61  ;;  %v779_v10 = vsub.f32 %v2036_v21, %v2190_v38  ;;  %v780_v54 = vsub.f32 %v2038_v22, %v2194_v39  ;;  %v2671_v61 = vld [vmem:[#allocation25_spill] sm:$0xff] }
 0x22a   : > { %v2288_v14 = vpop.eup %1444  ;;  %1470 = vpow2.f32 %v771_v53  ;;  %v881_v19 = vadd.f32 %v2283_v13, %v880_v3  ;;  %v781_v55 = vsub.f32 %v2671_v61, %v2190_v38  ;;  %v782_v3 = vsub.f32 %v2042_v24, %v2194_v39 }
 0x22b   : > { %v2293_v4 = vpop.eup %1446  ;;  %1472 = vpow2.f32 %v772_v58  ;;  %v918_v6 = vadd.f32 %v2288_v14, %v917_v1  ;;  %v783_v1 = vsub.f32 %v2044_v25, %v2190_v38 }
 0x22c   : > { %v2298_v16 = vpop.eup %1448  ;;  %1474 = vpow2.f32 %v773_v62  ;;  %v882_v46 = vadd.f32 %v2293_v4, %v881_v19 }
 0x22d   : > { %v2303_v17 = vpop.eup %1450  ;;  %1476 = vpow2.f32 %v774_v0  ;;  %v919_v50 = vadd.f32 %v2298_v16, %v918_v6 }
 0x22e   : > { %v2308_v18 = vpop.eup %1452  ;;  %1478 = vpow2.f32 %v775_v63  ;;  %v883_v51 = vadd.f32 %v2303_v17, %v882_v46 }
 0x22f   : > { %v2313_v53 = vpop.eup %1454  ;;  %1480 = vpow2.f32 %v776_v41  ;;  %v920_v58 = vadd.f32 %v2308_v18, %v919_v50  ;;  %v784_v41 = vsub.f32 %v2046_v26, %v2194_v39 }
 0x230   : > { %v2318_v20 = vpop.eup %1456  ;;  %1482 = vpow2.f32 %v777_v8  ;;  %v884_v62 = vadd.f32 %v2313_v53, %v883_v51  ;;  %v785_v8 = vsub.f32 %v2672_v59, %v2190_v38  ;;  %v792_v59 = vsub.f32 %v2062_v34, %v2194_v39 }
 0x231   : > { %v2323_v21 = vpop.eup %1458  ;;  %1484 = vpow2.f32 %v778_v49  ;;  %v921_v0 = vadd.f32 %v2318_v20, %v920_v58  ;;  %v786_v49 = vsub.f32 %v2050_v28, %v2194_v39  ;;  %v788_v58 = vsub.f32 %v2054_v30, %v2194_v39 }
 0x232   : > { %v2328_v22 = vpop.eup %1460  ;;  %1486 = vpow2.f32 %v779_v10  ;;  %v885_v63 = vadd.f32 %v2323_v21, %v884_v62  ;;  %v787_v10 = vsub.f32 %v2052_v29, %v2190_v38  ;;  %v790_v29 = vsub.f32 %v2058_v32, %v2194_v39 }
 0x233   : > { %v2333_v19 = vpop.eup %1462  ;;  %1488 = vpow2.f32 %v780_v54  ;;  %v922_v6 = vadd.f32 %v2328_v22, %v921_v0  ;;  %v791_v30 = vsub.f32 %v2060_v33, %v2190_v38 }
 0x234   : > { %v2338_v24 = vpop.eup %1464  ;;  %1490 = vpow2.f32 %v781_v55  ;;  %v886_v46 = vadd.f32 %v2333_v19, %v885_v63  ;;  %v2673_v55 = vld [vmem:[#allocation27_spill] sm:$0xff] }
 0x235   : > { %v2343_v25 = vpop.eup %1466  ;;  %1492 = vpow2.f32 %v782_v3  ;;  %v923_v50 = vadd.f32 %v2338_v24, %v922_v6  ;;  %v789_v62 = vsub.f32 %v2673_v55, %v2190_v38  ;;  %v795_v55 = vsub.f32 %v2068_v37, %v2190_v38 }
 0x236   : > { %v2348_v26 = vpop.eup %1468  ;;  %1494 = vpow2.f32 %v783_v1  ;;  %v887_v51 = vadd.f32 %v2343_v25, %v886_v46 }
 0x237   : > { %v2353_v54 = vpop.eup %1470  ;;  %1496 = vpow2.f32 %v784_v41  ;;  %v924_v61 = vadd.f32 %v2348_v26, %v923_v50  ;;  %v2674_v50 = vld [vmem:[#allocation28_spill] sm:$0xff] }
 0x238   : > { %v1473_v28 = vpop.eup %1472  ;;  %1498 = vpow2.f32 %v785_v8  ;;  %v888_v3 = vadd.f32 %v2353_v54, %v887_v51  ;;  %v793_v51 = vsub.f32 %v2674_v50, %v2190_v38 }
 0x239   : > { %v2361_v0 = vpop.eup %1474  ;;  %1500 = vpow2.f32 %v786_v49  ;;  %v925_v1 = vadd.f32 %v1473_v28, %v924_v61  ;;  %v794_v61 = vsub.f32 %v2066_v36, %v2194_v39  ;;  %v2675_v36 = vld [vmem:[#allocation29_spill] sm:$0xff] }
 0x23a   : > { %v1477_v63 = vpop.eup %1476  ;;  %1502 = vpow2.f32 %v787_v10  ;;  %v889_v41 = vadd.f32 %v2361_v0, %v888_v3 }
 0x23b   : > { %v1479_v6 = vpop.eup %1478  ;;  %1504 = vpow2.f32 %v788_v58  ;;  %v926_v8 = vadd.f32 %v1477_v63, %v925_v1  ;;  %v796_v1 = vsub.f32 %v2074_v40, %v2194_v39  ;;  %v1015_v40 = vpack.c.bf16 %v1477_v63, %v1473_v28 }
 0x23c   : > { %v1481_v46 = vpop.eup %1480  ;;  %1506 = vpow2.f32 %v789_v62  ;;  %v890_v32 = vadd.f32 %v1479_v6, %v889_v41 }
 0x23d   : > { %v1483_v49 = vpop.eup %1482  ;;  %1508 = vpow2.f32 %v790_v29  ;;  %v927_v33 = vadd.f32 %v1481_v46, %v926_v8  ;;  %v797_v29 = vsub.f32 %v2675_v36, %v2190_v38  ;;  %v1014_v36 = vpack.c.bf16 %v2361_v0, %v2353_v54  ;;  %v2682_v0 = vld [vmem:[#allocation36_spill] sm:$0xff] }
 0x23e   : > { %v1485_v10 = vpop.eup %1484  ;;  %1510 = vpow2.f32 %v791_v30  ;;  %v891_v34 = vadd.f32 %v1483_v49, %v890_v32  ;;  %v1016_v58 = vpack.c.bf16 %v1483_v49, %v1479_v6  ;;  %v2676_v30 = vld [vmem:[#allocation30_spill] sm:$0xff] }
 0x23f   : > { %v2376_v3 = vpop.eup %1486  ;;  %1512 = vpow2.f32 %v792_v59  ;;  %v928_v62 = vadd.f32 %v1485_v10, %v927_v33  ;;  %v1017_v41 = vpack.c.bf16 %v1485_v10, %v1481_v46  ;;  %v798_v6 = vsub.f32 %v2676_v30, %v2194_v39  ;;  %v2677_v46 = vld [vmem:[#allocation31_spill] sm:$0xff] }
 0x240   : > { %v2380_v50 = vpop.eup %1488  ;;  %1514 = vpow2.f32 %v793_v51  ;;  %v892_v8 = vadd.f32 %v2376_v3, %v891_v34  ;;  %v799_v49 = vsub.f32 %v2677_v46, %v2190_v38 }
 0x241   : > { %v2385_v37 = vpop.eup %1490  ;;  %1516 = vpow2.f32 %v794_v61  ;;  %v929_v32 = vadd.f32 %v2380_v50, %v928_v62  ;;  %1034 = vmatprep.subr.bf16.mxu1 %v1017_v41  ;;  %v2678_v61 = vld [vmem:[#allocation32_spill] sm:$0xff] }
 0x242   : > { %v2390_v59 = vpop.eup %1492  ;;  %1518 = vpow2.f32 %v795_v55  ;;  %v893_v51 = vadd.f32 %v2385_v37, %v892_v8  ;;  %1035 = vmatpush1.bf16.msra.mxu1 %v1016_v58  ;;  %v1018_v33 = vpack.c.bf16 %v2385_v37, %v2376_v3  ;;  %v800_v34 = vsub.f32 %v2678_v61, %v2194_v39  ;;  %v2679_v55 = vld [vmem:[#allocation33_spill] sm:$0xff] }
 0x243   : > { %v2397_v10 = vpop.eup %1494  ;;  %1520 = vpow2.f32 %v796_v1  ;;  %v930_v28 = vadd.f32 %v2390_v59, %v929_v32  ;;  %1036 = vmatprep.subr.bf16.mxu1 %v1015_v40  ;;  %v1019_v63 = vpack.c.bf16 %v2390_v59, %v2380_v50  ;;  %v801_v58 = vsub.f32 %v2679_v55, %v2190_v38  ;;  %v2680_v1 = vld [vmem:[#allocation34_spill] sm:$0xff] }
 0x244   : > { %v2404_v62 = vpop.eup %1496  ;;  %1522 = vpow2.f32 %v797_v29  ;;  %v894_v41 = vadd.f32 %v2397_v10, %v893_v51  ;;  %v802_v30 = vsub.f32 %v2680_v1, %v2194_v39  ;;  %v1013_v40 = vpack.c.bf16 %v2348_v26, %v2338_v24  ;;  %v2681_v29 = vld [vmem:[#allocation35_spill] sm:$0xff]  ;;  %v2683_v24 = vld [vmem:[#allocation37_spill] sm:$0xff]  ;;  %v2684_v1 = vld [vmem:[#allocation38_spill] sm:$0xff] }
 0x245   : > { %v2411_v8 = vpop.eup %1498  ;;  %1524 = vpow2.f32 %v798_v6  ;;  %v931_v32 = vadd.f32 %v2404_v62, %v930_v28  ;;  %v803_v61 = vsub.f32 %v2681_v29, %v2190_v38  ;;  %v804_v55 = vsub.f32 %v2682_v0, %v2194_v39 }
 0x246   : > { %v2418_v46 = vpop.eup %1500  ;;  %1526 = vpow2.f32 %v799_v49  ;;  %v895_v51 = vadd.f32 %v2411_v8, %v894_v41  ;;  %1037 = vmatpush1.bf16.msra.mxu1 %v1014_v36  ;;  %v805_v26 = vsub.f32 %v2683_v24, %v2190_v38  ;;  %v1012_v41 = vpack.c.bf16 %v2343_v25, %v2333_v19 }
 0x247   : > { %v2423_v54 = vpop.eup %1502  ;;  %1528 = vpow2.f32 %v800_v34  ;;  %v932_v6 = vadd.f32 %v2418_v46, %v931_v32  ;;  %1038 = vmatprep.subr.bf16.mxu1 %v1013_v40  ;;  %v806_v29 = vsub.f32 %v2684_v1, %v2194_v39  ;;  %v1011_v32 = vpack.c.bf16 %v2328_v22, %v2318_v20  ;;  %v2686_v20 = vld [vmem:[#allocation40_spill] sm:$0xff] }
 0x248   : > { %v2428_v28 = vpop.eup %1504  ;;  %1530 = vpow2.f32 %v801_v58  ;;  %v896_v49 = vadd.f32 %v2423_v54, %v895_v51  ;;  %v2685_v58 = vld [vmem:[#allocation39_spill] sm:$0xff]  ;;  %v808_v25 = vsub.f32 %v2148_v35, %v2194_v39  ;;  %v809_v22 = vsub.f32 %v2686_v20, %v2190_v38 }
 0x249   : > { %v2435_v36 = vpop.eup %1506  ;;  %1532 = vpow2.f32 %v802_v30  ;;  %v933_v34 = vadd.f32 %v2428_v28, %v932_v6  ;;  %v807_v0 = vsub.f32 %v2685_v58, %v2190_v38  ;;  %v1010_v24 = vpack.c.bf16 %v2323_v21, %v2313_v53 }
 0x24a   : > { %v2442_v40 = vpop.eup %1508  ;;  %1534 = vpow2.f32 %v803_v61  ;;  %v897_v51 = vadd.f32 %v2435_v36, %v896_v49  ;;  %1039 = vmatpush1.bf16.msra.mxu1 %v1012_v41  ;;  %v810_v35 = vsub.f32 %v2160_v7, %v2194_v39  ;;  %v1009_v41 = vpack.c.bf16 %v2308_v18, %v2298_v16 }
 0x24b   : > { %v2447_v19 = vpop.eup %1510  ;;  %1536 = vpow2.f32 %v804_v55  ;;  %v934_v30 = vadd.f32 %v2442_v40, %v933_v34  ;;  %1040 = vmatprep.subr.bf16.mxu1 %v1011_v32  ;;  %v1008_v39 = vpack.c.bf16 %v2303_v17, %v2293_v4  ;;  %v1006_v4 = vpack.c.bf16 %v2283_v13, %v2273_v56 }
 0x24c   : > { %v2452_v6 = vpop.eup %1512  ;;  %1538 = vpow2.f32 %v805_v26  ;;  %v898_v61 = vadd.f32 %v2447_v19, %v897_v51  ;;  %v1005_v20 = vpack.c.bf16 %v2268_v52, %v2258_v9 }
 0x24d   : > { %v2459_v49 = vpop.eup %1514  ;;  %1540 = vpow2.f32 %v806_v29  ;;  %v935_v55 = vadd.f32 %v2452_v6, %v934_v30  ;;  %v1007_v29 = vpack.c.bf16 %v2288_v14, %v2278_v12 }
 0x24e   : > { %v2466_v1 = vpop.eup %1516  ;;  %1542 = vpow2.f32 %v807_v0  ;;  %v899_v38 = vadd.f32 %v2459_v49, %v898_v61  ;;  %1041 = vmatpush1.bf16.msra.mxu1 %v1010_v24 }
 0x24f   : > { %v2469_v26 = vpop.eup %1518  ;;  %1544 = vpow2.f32 %v808_v25  ;;  %v936_v53 = vadd.f32 %v2466_v1, %v935_v55  ;;  %1042 = vmatprep.subr.bf16.mxu1 %v1009_v41 }
 0x250   : > { %v2472_v21 = vpop.eup %1520  ;;  %1546 = vpow2.f32 %v809_v22  ;;  %v900_v7 = vadd.f32 %v2469_v26, %v899_v38  ;;  %v1004_v38 = vpack.c.bf16 %v2263_v48, %v2250_v43 }
 0x251   : > { %v2477_v16 = vpop.eup %1522  ;;  %1548 = vpow2.f32 %v810_v35  ;;  %v937_v18 = vadd.f32 %v2472_v21, %v936_v53 }
 0x252   : > { %v2482_v34 = vpop.eup %1524  ;;  %v901_v32 = vadd.f32 %v2477_v16, %v900_v7  ;;  %1043 = vmatpush1.bf16.msra.mxu1 %v1008_v39  ;;  %1550 = vpow2.f32 %v734_v23  ;;  %v1026_v11 = vpack.c.bf16 %v2477_v16, %v2469_v26  ;;  %v1023_v26 = vpack.c.bf16 %v2442_v40, %v2428_v28  ;;  %v386_v28 = vld [vmem:[%s2175_s18] sm:$0xff]  ;;  %v388_v40 = vld [vmem:[%s2175_s18 + $0x10] sm:$0xff] }
 0x253   : > { %v1527_v58 = vpop.eup %1526  ;;  %v938_v0 = vadd.f32 %v2482_v34, %v937_v18  ;;  %1044 = vmatprep.subr.bf16.mxu1 %v1007_v29 }
 0x254   : > { %v1529_v51 = vpop.eup %1528  ;;  %v902_v25 = vadd.f32 %v1527_v58, %v901_v32 }
 0x255   : > { %v1531_v17 = vpop.eup %1530  ;;  %v939_v30 = vadd.f32 %v1529_v51, %v938_v0 }
 0x256   : > { %v1533_v12 = vpop.eup %1532  ;;  %v903_v14 = vadd.f32 %v1531_v17, %v902_v25  ;;  %1045 = vmatpush1.bf16.msra.mxu1 %v1006_v4  ;;  %v1028_v22 = vpack.c.bf16 %v1531_v17, %v1527_v58 }
 0x257   : > { %v1535_v61 = vpop.eup %1534  ;;  %v940_v24 = vadd.f32 %v1533_v12, %v939_v30  ;;  %1046 = vmatprep.subr.bf16.mxu1 %v1005_v20  ;;  %v1029_v35 = vpack.c.bf16 %v1533_v12, %v1529_v51 }
 0x258   : > { %v1537_v55 = vpop.eup %1536  ;;  %v904_v41 = vadd.f32 %v1535_v61, %v903_v14  ;;  %v1027_v14 = vpack.c.bf16 %v2482_v34, %v2472_v21  ;;  %v1024_v21 = vpack.c.bf16 %v2459_v49, %v2447_v19  ;;  %v1021_v19 = vpack.c.bf16 %v2418_v46, %v2404_v62  ;;  %v390_v46 = vld [vmem:[%s2175_s18 + $0x20] sm:$0xff]  ;;  %v392_v49 = vld [vmem:[%s2175_s18 + $0x30] sm:$0xff] }
 0x259   : > { %v1539_v53 = vpop.eup %1538  ;;  %v941_v56 = vadd.f32 %v1537_v55, %v940_v24  ;;  %v1025_v24 = vpack.c.bf16 %v2466_v1, %v2452_v6  ;;  %v1022_v1 = vpack.c.bf16 %v2435_v36, %v2423_v54  ;;  %v391_v54 = vld [vmem:[%s2175_s18 + $0x28] sm:$0xff]  ;;  %v394_v36 = vpack.c.bf16 %v388_v40, %v386_v28 }
 0x25a   : > { %v1541_v13 = vpop.eup %1540  ;;  %v905_v7 = vadd.f32 %v1539_v53, %v904_v41  ;;  %1047 = vmatpush1.bf16.msra.mxu1 %v1004_v38  ;;  %v1030_v39 = vpack.c.bf16 %v1539_v53, %v1535_v61  ;;  %v875_v41 = vld [vmem:[#allocation3] sm:$0x3]  ;;  %v397_v62 = vpack.c.bf16 %v393_v57, %v391_v54 }
 0x25b   : > { %v1543_v9 = vpop.eup %1542  ;;  %v942_v52 = vadd.f32 %v1541_v13, %v941_v56  ;;  %1048 = vmatprep.subr.bf16.mxu1 %v1003_v44  ;;  %v1031_v18 = vpack.c.bf16 %v1541_v13, %v1537_v55 }
 0x25c   : > { %v1545_v29 = vpop.eup %1544  ;;  %v906_v32 = vadd.f32 %v1543_v9, %v905_v7 }
 0x25d   : > { %v1547_v58 = vpop.eup %1546  ;;  %v943_v0 = vadd.f32 %v1545_v29, %v942_v52 }
 0x25e   : > { %v1549_v51 = vpop.eup %1548  ;;  %v907_v25 = vadd.f32 %v1547_v58, %v906_v32  ;;  %1049 = vmatpush1.bf16.msra.mxu1 %v1002_v42  ;;  %v1032_v43 = vpack.c.bf16 %v1547_v58, %v1543_v9 }
 0x25f   : > { %v944_v48 = vadd.f32 %v1549_v51, %v943_v0  ;;  %v1033_v4 = vpack.c.bf16 %v1549_v51, %v1545_v29  ;;  %v1551_v55 = vpop.eup %1550 }
 0x260   : > { %v908_v17 = vrot.slane %v907_v25, 4  ;;  %v876_v34 = vmul.f32 %v1551_v55, %v875_v41  ;;  %v987_v50 = vrot.slane %v1551_v55, %v2184_v31  ;;  %v991_v59 = vrot.slane %v1551_v55, %v2186_v45 }
 0x261   : > { %v945_v2 = vrot.slane %v944_v48, 4  ;;  %1050 = vmatprep.subr.bf16.mxu1 %v1033_v4 }
 0x262   : > { %v909_v5 = vadd.f32 %v908_v17, %v907_v25  ;;  %1051 = vmatpush2.bf16.msra.mxu1 %v1032_v43  ;;  %v994_v16 = vmul.f32 0.0, %v987_v50  ;;  %v995_v37 = vmul.f32 0.0, %v991_v59 }
 0x263   : > { %v946_v44 = vadd.f32 %v945_v2, %v944_v48  ;;  %1052 = vmatprep.subr.bf16.mxu1 %v1031_v18 }
 0x264   : > { %v910_v30 = vrot.slane %v909_v5, 2 }
 0x265   : > { %v947_v20 = vrot.slane %v946_v44, 2 }
 0x266   : > { %v911_v12 = vadd.f32 %v910_v30, %v909_v5  ;;  %1053 = vmatpush2.bf16.msra.mxu1 %v1030_v39 }
 0x267   : > { %v948_v15 = vadd.f32 %v947_v20, %v946_v44  ;;  %1054 = vmatprep.subr.bf16.mxu1 %v1029_v35 }
 0x268   : > { %v912_v27 = vrot.slane %v911_v12, 1 }
 0x269   : > { %v949_v42 = vrot.slane %v948_v15, 1 }
 0x26a   : > { %v913_v61 = vadd.f32 %v912_v27, %v911_v12  ;;  %1055 = vmatpush2.bf16.msra.mxu1 %v1028_v22 }
 0x26b   : > { %v950_v60 = vadd.f32 %v949_v42, %v948_v15  ;;  %1056 = vmatprep.subr.bf16.mxu1 %v1027_v14 }
 0x26d   : > { %v953_v23 = vcombine.low %v913_v61, %v950_v60 }
 0x26e   : > { %1057 = vmatpush2.bf16.msra.mxu1 %v1026_v11 }
 0x26f   : > { %v960_v35 = vrot.slane %v953_v23, %v2165_v47  ;;  %1058 = vmatprep.subr.bf16.mxu1 %v1025_v24 }
 0x271   : > { %v967_v22 = vrot.slane %v960_v35, %v2165_v47  ;;  %v1020_v47 = vpack.c.bf16 %v2411_v8, %v2397_v10  ;;  %v396_v10 = vpack.c.bf16 %v392_v49, %v390_v46 }
 0x272   : > { %1059 = vmatpush2.bf16.msra.mxu1 %v1024_v21 }
 0x273   : > { %v969_v6 = vadd.f32 %v967_v22, %v876_v34  ;;  %1060 = vmatprep.subr.bf16.mxu1 %v1023_v26 }
 0x275   : > { %974 = vst.msk [vmem:[#allocation3] sm:$0x3] %vm1978_vm1, %v969_v6 }
 0x276   : > { %1061 = vmatpush2.bf16.msra.mxu1 %v1022_v1 }
 0x277   : > { %1062 = vmatprep.subr.bf16.mxu1 %v1021_v19 }
 0x27a   : > { %1063 = vmatpush2.bf16.msra.mxu1 %v1020_v47 }
 0x27b   : > { %1064 = vmatprep.subr.bf16.mxu1 %v1019_v63 }
 0x27c   : > { %v1107_v8 = vld [vmem:[#allocation3] sm:$0x3] }
 0x27d   : > { %1552 = vrcp.f32 %v1107_v8 }
 0x27e   : > { %1065 = vmatpush2.bf16.msra.mxu1 %v1018_v33 }
 0x281   : > { %1067 = vmatmul.mubr.bf16.vlgmr.msra.gmra.mxu1 %v394_v36 }
 0x282   : > { %1076 = vmatprep.mubr.bf16.mxu1 %v397_v62 }
 0x289   : > { %1077 = vmatmul.mubr.bf16.gmra.mxu1 %v396_v10 }
 0x28a   : > { %v1553_v63 = vpop.eup %1552 }
 0x28b   : > { %v1121_v3 = vrot.slane %v1553_v63, %v2184_v31  ;;  %v1125_v7 = vrot.slane %v1553_v63, %v2186_v45 }
 0x341   : > { %v1068_v38 = vpop.f32.mrf.mxu1 }
 0x342   : > { %v1087_v53 = vadd.f32 %v1068_v38, %v994_v16 }
 0x343   : > { %v1070_v33 = vpop.f32.mrf.mxu1 }
 0x344   : > { %v1128_v56 = vmul.f32 %v1121_v3, %v1087_v53  ;;  %v1088_v13 = vadd.f32 %v1070_v33, %v995_v37 }
 0x345   : > { %v1072_v39 = vpop.f32.mrf.mxu1 }
 0x346   : > { %1136 = vst [vmem:[%s298_s24] sm:$0xff] %v1128_v56  ;;  %v1129_v9 = vmul.f32 %v1125_v7, %v1088_v13  ;;  %v1089_v52 = vadd.f32 %v1072_v39, %v994_v16 }
 0x347   : > { %v1074_v18 = vpop.f32.mrf.mxu1 }
 0x348   : > { %1137 = vst [vmem:[%s298_s24 + $0x8] sm:$0xff] %v1129_v9  ;;  %v1130_v29 = vmul.f32 %v1121_v3, %v1089_v52  ;;  %v1090_v32 = vadd.f32 %v1074_v18, %v995_v37 }
 0x349   : > { %v1078_v58 = vpop.f32.mrf.mxu1 }
 0x34a   : > { %1138 = vst [vmem:[%s298_s24 + $0x10] sm:$0xff] %v1130_v29  ;;  %v1131_v0 = vmul.f32 %v1125_v7, %v1090_v32  ;;  %v1091_v31 = vadd.f32 %v1078_v58, %v994_v16 }
 0x34b   : > { %v1080_v51 = vpop.f32.mrf.mxu1 }
 0x34c   : > { %1139 = vst [vmem:[%s298_s24 + $0x18] sm:$0xff] %v1131_v0  ;;  %v1132_v25 = vmul.f32 %v1121_v3, %v1091_v31  ;;  %v1092_v43 = vadd.f32 %v1080_v51, %v995_v37 }
 0x34d   : > { %v1082_v45 = vpop.f32.mrf.mxu1 }
 0x34e   : > { %1140 = vst [vmem:[%s298_s24 + $0x20] sm:$0xff] %v1132_v25  ;;  %v1133_v48 = vmul.f32 %v1125_v7, %v1092_v43  ;;  %v1093_v4 = vadd.f32 %v1082_v45, %v994_v16 }
 0x34f   : > { %v1084_v17 = vpop.f32.mrf.mxu1 }
 0x350   : > { %1141 = vst [vmem:[%s298_s24 + $0x28] sm:$0xff] %v1133_v48  ;;  %v1134_v2 = vmul.f32 %v1121_v3, %v1093_v4  ;;  %v1094_v5 = vadd.f32 %v1084_v17, %v995_v37 }
 0x352   : > { %1142 = vst [vmem:[%s298_s24 + $0x30] sm:$0xff] %v1134_v2  ;;  %v1135_v44 = vmul.f32 %v1125_v7, %v1094_v5 }
 0x354   : > { %1143 = vst [vmem:[%s298_s24 + $0x38] sm:$0xff] %v1135_v44 }
 0x355   : > { %1651 = shalt.err (!%p1648_p12)
}
 0x356   : > { %s1652_s8 = scalar_lea.hbm %s2544_s16, 1024  ;;  %s1656_s4 = scalar_lea.hbm %s2595_s3, 2048 }
 0x357   : > { %p1653_p1 = scmp.ne.s32.totalorder %s2544_s16, %s1652_s8  ;;  %p1657_p6 = scmp.lt.s32.totalorder %s2544_s16, %s2595_s3 }
 0x358   : > { %p1658_p7 = scmp.lt.s32.totalorder %s1656_s4, %s1652_s8 }
 0x359   : > { %p1654_p2 = pnand %p1653_p1, %p1811_p9 }
 0x35a   : > { %p1659_p8 = por %p1658_p7, %p1657_p6 }
 0x35b   : > { %p1655_p5 = pneg %p1654_p2 }
 0x35d   : > { %p1660_p0 = pnand %p1659_p8, %p1655_p5 }
 0x35f   : > { %1663 = shalt.err (!%p1660_p0)
}
 0x360   : > { %s1734_s20 = smov 256   ;;  %s1735_s30 = smov 16  }
 0x361   : > { %1348 = dma.vmem_to_hbm [thread:$0]  (%p1811_p9), %s2539_s5, 1024, %s2544_s16, %s1145_s28, %s1734_s20, %s1734_s20, %s1735_s30  }
 0x362 PF: > { %s1175_s11 = sand.u32 1, %s1702_s12   ;;  %p2687_p3 = scmp.ge.s32.totalorder %s1722_s17, 2 }
 0x363   : > { %s1176_s18 = scalar_lea.sflag [#allocation7], %s1175_s11 }
 0x364   : > { %p1361_p4 = pnand %p2687_p3, %p1818_p11 }
 0x366   : > { %p1362_p10 = pneg %p1361_p4 }
 0x368   : > { %1697 = dma.done.wait (%p1362_p10), %s1176_s18, 1024  }
 0x369   : > { %1699 = vsyncadd (%p1362_p10), %s1176_s18, 4294966272  ;;  %s22_s17 = sadd.s32 1, %s1722_s17   ;;  %s2688_s25 = sld [smem:[#allocation17_spill]] }
 0x36a   : > { %p19_p13 = scmp.ge.s32.totalorder %s22_s17, 4   ;;  %s2689_s15 = sld [smem:[#allocation15_spill]] }
 0x36b   : > { %s2690_s16 = sld [smem:[#allocation16_spill]]  ;;  %s2691_s12 = smov %s1706_s13 }
 0x36c   : > { %s2692_s13 = smov %s1710_s14  ;;  %21 = sbr.rel (!%p19_p13) target bundleno = 10 (0xa), region = 109 }
 0x36f   : > { %s2693_s14 = smov %s2688_s25 }
 0x371   :  { %1181 = vsyncpa [#allocation6], 1 }
 0x372   :  { %1183 = vsyncpa [#allocation6 + $0x1], 1 }
 0x373   :  { %1184 = vsyncpa [#allocation9], 1 }
 0x374   :  { %1186 = vsyncpa [#allocation9 + $0x1], 1 }
 0x375   :  { %1187 = vsyncpa [#allocation7], 1 }
 0x376   :  { %1189 = vsyncpa [#allocation7 + $0x1], 1 }

</bundles_post_ra>
